<compile_context>
chip_gen: v6e
topology: v6e:2x2x1
jax: 0.10.0
libtpu: 0.0.40
codegen_flags: <defaults>
</compile_context>

<pallas_src>
import functools
import math

import jax
import jax.numpy as jnp
from jax import lax
from jax.experimental import pallas as pl
from jax.experimental.pallas import tpu as pltpu


def _round_up(x, m):
    return ((x + m - 1) // m) * m


def _make_gated_kernel(d, res_scale, tile_l, C, n_state, wide_k):
    d = int(d)

    def kernel(x_any, xc_ref, wg_ref, bg_ref, w2_ref, b2_ref,
               o_ref, win_ref, lh_ref, rh_ref, sem_ref):
        n = pl.program_id(0)
        t = pl.program_id(1)
        num_t = pl.num_programs(1)
        l0 = t * tile_l

        # ---- start the tiny halo DMAs early (overlap with window assembly) ----
        @pl.when(t > 0)
        def _():
            pltpu.make_async_copy(
                x_any.at[n, pl.ds(l0 - d, d), :], lh_ref, sem_ref.at[0]).start()

        @pl.when(t < num_t - 1)
        def _():
            pltpu.make_async_copy(
                x_any.at[n, pl.ds(l0 + tile_l, d), :], rh_ref, sem_ref.at[1]).start()

        # ---- assemble zero-padded window [left halo | center | right halo] ----
        xc = xc_ref[0]                                  # (tile_l, C), auto-pipelined
        win_ref[pl.ds(d, tile_l), :] = xc

        @pl.when(t == 0)
        def _():
            win_ref[pl.ds(0, d), :] = jnp.zeros((d, C), jnp.float32)

        @pl.when(t > 0)
        def _():
            pltpu.make_async_copy(
                x_any.at[n, pl.ds(l0 - d, d), :], lh_ref, sem_ref.at[0]).wait()
            win_ref[pl.ds(0, d), :] = lh_ref[...]

        @pl.when(t == num_t - 1)
        def _():
            win_ref[pl.ds(tile_l + d, d), :] = jnp.zeros((d, C), jnp.float32)

        @pl.when(t < num_t - 1)
        def _():
            pltpu.make_async_copy(
                x_any.at[n, pl.ds(l0 + tile_l, d), :], rh_ref, sem_ref.at[1]).wait()
            win_ref[pl.ds(tile_l + d, d), :] = rh_ref[...]

        # tanh(0) == 0, so the zero halo reproduces PyTorch's zero conv padding.
        a = jnp.tanh(win_ref[...].astype(jnp.float32))  # (tile_l + 2d, C)
        a_m = a[0:tile_l]                               # input position t - d
        a_c = a[d:d + tile_l]                           # t
        a_p = a[2 * d:2 * d + tile_l]                   # t + d

        if wide_k:
            # single wide-K matmul for BOTH gate halves:
            # (tile_l, 3C) @ (3C, 2*n_state)
            acat = jnp.concatenate([a_m, a_c, a_p], axis=-1)
            z = jnp.dot(acat, wg_ref[...], preferred_element_type=jnp.float32)
        else:
            z = (jnp.dot(a_m, wg_ref[0], preferred_element_type=jnp.float32)
                 + jnp.dot(a_c, wg_ref[1], preferred_element_type=jnp.float32)
                 + jnp.dot(a_p, wg_ref[2], preferred_element_type=jnp.float32))
        z = z + bg_ref[...]
        zg = z[:, :n_state]                             # sigmoid half
        zf = z[:, n_state:]                             # tanh half

        h = (1.0 / (1.0 + jnp.exp(-zg))) * jnp.tanh(zf)        # sigmoid * tanh gate
        y = jnp.dot(h, w2_ref[...], preferred_element_type=jnp.float32) + b2_ref[...]

        o_ref[0] = (xc.astype(jnp.float32)
                    + jnp.float32(res_scale) * y).astype(o_ref.dtype)

    return kernel


def init_gated_block_params(key, n_in, n_state, zero_out=False):
    """Deterministic synthetic params with the same layouts as the PyTorch module."""
    k1, k2, k3, k4 = jax.random.split(key, 4)
    w_gates = jax.random.normal(k1, (2 * n_state, n_in, 3), jnp.float32) * 0.1
    b_gates = jax.random.normal(k2, (2 * n_state,), jnp.float32) * 0.1
    w_out = jax.random.normal(k3, (n_in, n_state, 1), jnp.float32) * 0.1
    b_out = jax.random.normal(k4, (n_in,), jnp.float32) * 0.1
    if zero_out:
        # NOTE: the reference module's zero_out branch references self.model[-1],
        # which does not exist; the intent (zeroed output conv) is applied here.
        w_out = jnp.zeros_like(w_out)
        b_out = jnp.zeros_like(b_out)
    return dict(w_gates=w_gates, b_gates=b_gates, w_out=w_out, b_out=b_out)


def _kernel_weights(params, n_state, wide_k):
    """PyTorch Conv1d layouts -> kernel-friendly (fused) matmul layouts."""
    # (2*n_state, n_in, 3) -> (3, n_in, 2*n_state); w[k, i, j] = W[j, i, k]
    w_g = jnp.transpose(params["w_gates"], (2, 1, 0))
    if wide_k:
        w_g = w_g.reshape(3 * w_g.shape[1], w_g.shape[2])   # (3*n_in, 2*n_state)
    b_g = params["b_gates"].reshape(1, 2 * n_state)          # (1, 2*n_state)
    w2 = jnp.transpose(params["w_out"][:, :, 0], (1, 0))     # (n_state, n_in)
    b2 = params["b_out"].reshape(1, -1)                      # (1, n_in)
    return w_g, b_g, w2, b2


def res_conv1d_gated_block(x_ncl, params, *, dilation=1, res_scale=1.0, tile_l=256):
    """Forward pass of ResConv1DGatedBlock.  x_ncl: (N, C, L) like PyTorch."""
    N, C, L = x_ncl.shape
    n_state = params["w_gates"].shape[0] // 2
    d = int(dilation)
    wide_k = (C % 128 == 0)
    w_g, b_g, w2, b2 = _kernel_weights(params, n_state, wide_k)

    # L tile: multiple of 8 sublanes, >= dilation (halo must fit in one neighbor
    # tile), no larger than the padded sequence.  Default 256 for real shapes.
    tl = min(int(tile_l), _round_up(L, 8))
    tl = max(tl, _round_up(d, 8), 8)
    tl = _round_up(tl, 8)
    L_pad = _round_up(L, tl)
    num_t = L_pad // tl

    x_nlc = jnp.transpose(x_ncl, (0, 2, 1))     # NCL -> NLC (C on the lane axis)
    if L_pad != L:
        x_nlc = jnp.pad(x_nlc, ((0, 0), (0, L_pad - L), (0, 0)))

    kernel = _make_gated_kernel(d, float(res_scale), tl, C, n_state, wide_k)

    # Explicit VMEM budget: double-buffered in/out tiles, window + halo scratch,
    # resident weights and in-kernel temporaries, with headroom.
    f32 = 4
    est = (4 * tl * C
           + (tl + 2 * d) * C + 2 * d * C
           + 2 * (3 * C * 2 * n_state + 2 * n_state + n_state * C + C)
           + 2 * tl * (3 * C + 2 * n_state + C)) * f32
    vmem_limit = int(min(max(2 * est, 32 * 1024 * 1024), 48 * 1024 * 1024))

    def wspec(shape):
        return pl.BlockSpec(shape, lambda n, t, _s=len(shape): (0,) * _s)

    out = pl.pallas_call(
        kernel,
        out_shape=jax.ShapeDtypeStruct((N, L_pad, C), x_nlc.dtype),
        grid=(N, num_t),
        in_specs=[
            pl.BlockSpec(memory_space=pl.ANY),                  # halo source (HBM)
            pl.BlockSpec((1, tl, C), lambda n, t: (n, t, 0)),   # center tile
            wspec(w_g.shape), wspec(b_g.shape),
            wspec(w2.shape), wspec(b2.shape),
        ],
        out_specs=pl.BlockSpec((1, tl, C), lambda n, t: (n, t, 0)),
        scratch_shapes=[
            pltpu.VMEM((tl + 2 * d, C), jnp.float32),   # zero-padded window
            pltpu.VMEM((d, C), jnp.float32),            # left halo
            pltpu.VMEM((d, C), jnp.float32),            # right halo
            pltpu.SemaphoreType.DMA((2,)),
        ],
        compiler_params=pltpu.CompilerParams(
            dimension_semantics=("parallel", "parallel"),
            vmem_limit_bytes=vmem_limit,
        ),
    )(x_nlc, x_nlc, w_g, b_g, w2, b2)

    out = out[:, :L, :]
    return jnp.transpose(out, (0, 2, 1))        # back to NCL


def gated_block_reference(x_ncl, params, *, dilation=1, res_scale=1.0):
    """Pure-JAX reference (lax.conv_general_dilated, NCL layout)."""
    n_state = params["w_gates"].shape[0] // 2
    d = int(dilation)
    y = jnp.tanh(x_ncl)
    y = lax.conv_general_dilated(
        y, params["w_gates"], window_strides=(1,), padding=[(d, d)],
        rhs_dilation=(d,), dimension_numbers=("NCH", "OIH", "NCH"),
    ) + params["b_gates"][None, :, None]
    y = (1.0 / (1.0 + jnp.exp(-y[:, :n_state, :]))) * jnp.tanh(y[:, n_state:, :])
    y = lax.conv_general_dilated(
        y, params["w_out"], window_strides=(1,), padding=[(0, 0)],
        dimension_numbers=("NCH", "OIH", "NCH"),
    ) + params["b_out"][None, :, None]
    return x_ncl + res_scale * y


if __name__ == "__main__":
    # Small shapes: batch=2, n_in=128 (exercises the lane-aligned wide-K path),
    # n_state=64, L=40 with tile_l=16 so the halo-DMA / L-tiling path is used.
    N, C_in, n_state, L = 2, 128, 64, 40
    dilation = 2
    res_scale = 1.0 / math.sqrt(2.0)

    key = jax.random.PRNGKey(0)
    kx, kp = jax.random.split(key)
    x = jax.random.normal(kx, (N, C_in, L), jnp.float32)
    params = init_gated_block_params(kp, n_in=C_in, n_state=n_state, zero_out=False)

    fwd = functools.partial(res_conv1d_gated_block, params=params,
                            dilation=dilation, res_scale=res_scale, tile_l=16)
    y = jax.jit(fwd)(x)
    y = jax.block_until_ready(y)

    y_ref = gated_block_reference(x, params, dilation=dilation, res_scale=res_scale)

    assert y.shape == (N, C_in, L)
    max_err = float(jnp.max(jnp.abs(y - y_ref)))
    assert jnp.allclose(y, y_ref, atol=2e-4, rtol=2e-4), max_err
    print("KERNEL_OK")
</pallas_src>

<mosaic_0001>
module attributes {stable_mosaic.version = 11 : i64} {
  func.func @kernel(%arg0: i32, %arg1: i32, %arg2: memref<2x48x128xf32, #tpu.memory_space<any>>, %arg3: memref<1x16x128xf32, #tpu.memory_space<vmem>>, %arg4: memref<384x128xf32, #tpu.memory_space<vmem>>, %arg5: memref<1x128xf32, #tpu.memory_space<vmem>>, %arg6: memref<64x128xf32, #tpu.memory_space<vmem>>, %arg7: memref<1x128xf32, #tpu.memory_space<vmem>>, %arg8: memref<1x16x128xf32, #tpu.memory_space<vmem>>, %arg9: memref<20x128xf32, #tpu.memory_space<vmem>>, %arg10: memref<2x128xf32, #tpu.memory_space<vmem>>, %arg11: memref<2x128xf32, #tpu.memory_space<vmem>>, %arg12: memref<2x!tpu.dma_semaphore, #tpu.memory_space<semaphore_mem>>) attributes {dimension_semantics = [#tpu.dimension_semantics<parallel>, #tpu.dimension_semantics<parallel>], iteration_bounds = array<i64: 2, 3>, scalar_prefetch = 0 : i64, scratch_operands = 4 : i64, tpu.core_type = #tpu.core_type<tc>, window_params = [{}, {transform_indices = @transform_1, window_bounds = array<i64: 1, 16, 128>}, {pipeline_mode = #tpu.pipeline_mode<synchronous>, transform_indices = @transform_2, window_bounds = array<i64: 384, 128>}, {pipeline_mode = #tpu.pipeline_mode<synchronous>, transform_indices = @transform_3, window_bounds = array<i64: 1, 128>}, {pipeline_mode = #tpu.pipeline_mode<synchronous>, transform_indices = @transform_4, window_bounds = array<i64: 64, 128>}, {pipeline_mode = #tpu.pipeline_mode<synchronous>, transform_indices = @transform_5, window_bounds = array<i64: 1, 128>}, {transform_indices = @transform_6, window_bounds = array<i64: 1, 16, 128>}]} {
    %c16_i32 = arith.constant 16 : i32
    %0 = arith.muli %arg1, %c16_i32 : i32
    %c0_i32 = arith.constant 0 : i32
    %1 = arith.cmpi sgt, %arg1, %c0_i32 : i32
    %2 = arith.extui %1 : i1 to i32
    %c0_i32_0 = arith.constant 0 : i32
    %3 = arith.cmpi ne, %2, %c0_i32_0 : i32
    scf.if %3 {
      %c2_i32_31 = arith.constant 2 : i32
      %55 = arith.subi %0, %c2_i32_31 : i32
      %c0_i32_32 = arith.constant 0 : i32
      %c0_i32_33 = arith.constant 0 : i32
      %56 = tpu.memref_slice %arg2[%arg0, %55, %c0_i32_33] : memref<2x48x128xf32, #tpu.memory_space<any>> -> memref<1x2x128xf32, #tpu.memory_space<any>>
      %57 = tpu.memref_squeeze %56 : memref<1x2x128xf32, #tpu.memory_space<any>> -> memref<2x128xf32, #tpu.memory_space<any>>
      %58 = tpu.memref_slice %arg12[%c0_i32_32] : memref<2x!tpu.dma_semaphore, #tpu.memory_space<semaphore_mem>> -> memref<1x!tpu.dma_semaphore, #tpu.memory_space<semaphore_mem>>
      %59 = tpu.memref_squeeze %58 : memref<1x!tpu.dma_semaphore, #tpu.memory_space<semaphore_mem>> -> memref<!tpu.dma_semaphore, #tpu.memory_space<semaphore_mem>>
      tpu.enqueue_dma source(%57 : memref<2x128xf32, #tpu.memory_space<any>>) target(%arg10 : memref<2x128xf32, #tpu.memory_space<vmem>>) target_semaphore(%59 : memref<!tpu.dma_semaphore, #tpu.memory_space<semaphore_mem>>)
    } else {
    }
    %c2_i32 = arith.constant 2 : i32
    %4 = arith.cmpi slt, %arg1, %c2_i32 : i32
    %5 = arith.extui %4 : i1 to i32
    %c0_i32_1 = arith.constant 0 : i32
    %6 = arith.cmpi ne, %5, %c0_i32_1 : i32
    scf.if %6 {
      %c16_i32_31 = arith.constant 16 : i32
      %55 = arith.addi %0, %c16_i32_31 : i32
      %c1_i32 = arith.constant 1 : i32
      %c0_i32_32 = arith.constant 0 : i32
      %56 = tpu.memref_slice %arg2[%arg0, %55, %c0_i32_32] : memref<2x48x128xf32, #tpu.memory_space<any>> -> memref<1x2x128xf32, #tpu.memory_space<any>>
      %57 = tpu.memref_squeeze %56 : memref<1x2x128xf32, #tpu.memory_space<any>> -> memref<2x128xf32, #tpu.memory_space<any>>
      %58 = tpu.memref_slice %arg12[%c1_i32] : memref<2x!tpu.dma_semaphore, #tpu.memory_space<semaphore_mem>> -> memref<1x!tpu.dma_semaphore, #tpu.memory_space<semaphore_mem>>
      %59 = tpu.memref_squeeze %58 : memref<1x!tpu.dma_semaphore, #tpu.memory_space<semaphore_mem>> -> memref<!tpu.dma_semaphore, #tpu.memory_space<semaphore_mem>>
      tpu.enqueue_dma source(%57 : memref<2x128xf32, #tpu.memory_space<any>>) target(%arg11 : memref<2x128xf32, #tpu.memory_space<vmem>>) target_semaphore(%59 : memref<!tpu.dma_semaphore, #tpu.memory_space<semaphore_mem>>)
    } else {
    }
    %c0 = arith.constant 0 : index
    %c0_2 = arith.constant 0 : index
    %c0_3 = arith.constant 0 : index
    %7 = vector.load %arg3[%c0, %c0_2, %c0_3] : memref<1x16x128xf32, #tpu.memory_space<vmem>>, vector<1x16x128xf32>
    %8 = vector.shape_cast %7 : vector<1x16x128xf32> to vector<16x128xf32>
    %c2 = arith.constant 2 : index
    %c0_4 = arith.constant 0 : index
    %9 = vector.load %arg9[%c2, %c0_4] : memref<20x128xf32, #tpu.memory_space<vmem>>, vector<16x128xf32>
    tpu.vector_store %arg9[%c2, %c0_4], %8 {strides = array<i32>} : memref<20x128xf32, #tpu.memory_space<vmem>>, vector<16x128xf32>,
    %c0_i32_5 = arith.constant 0 : i32
    %10 = arith.cmpi eq, %arg1, %c0_i32_5 : i32
    %11 = arith.extui %10 : i1 to i32
    %c0_i32_6 = arith.constant 0 : i32
    %12 = arith.cmpi ne, %11, %c0_i32_6 : i32
    scf.if %12 {
      %cst_31 = arith.constant 0.000000e+00 : f32
      %55 = vector.broadcast %cst_31 : f32 to vector<2x128xf32>
      %c0_32 = arith.constant 0 : index
      %c0_33 = arith.constant 0 : index
      %56 = vector.load %arg9[%c0_32, %c0_33] : memref<20x128xf32, #tpu.memory_space<vmem>>, vector<2x128xf32>
      tpu.vector_store %arg9[%c0_32, %c0_33], %55 {strides = array<i32>} : memref<20x128xf32, #tpu.memory_space<vmem>>, vector<2x128xf32>,
    } else {
    }
    %c0_i32_7 = arith.constant 0 : i32
    %13 = arith.cmpi sgt, %arg1, %c0_i32_7 : i32
    %14 = arith.extui %13 : i1 to i32
    %c0_i32_8 = arith.constant 0 : i32
    %15 = arith.cmpi ne, %14, %c0_i32_8 : i32
    scf.if %15 {
      %c2_i32_31 = arith.constant 2 : i32
      %55 = arith.subi %0, %c2_i32_31 : i32
      %c0_i32_32 = arith.constant 0 : i32
      %c0_i32_33 = arith.constant 0 : i32
      %56 = tpu.memref_slice %arg2[%arg0, %55, %c0_i32_33] : memref<2x48x128xf32, #tpu.memory_space<any>> -> memref<1x2x128xf32, #tpu.memory_space<any>>
      %57 = tpu.memref_squeeze %56 : memref<1x2x128xf32, #tpu.memory_space<any>> -> memref<2x128xf32, #tpu.memory_space<any>>
      %58 = tpu.memref_slice %arg12[%c0_i32_32] : memref<2x!tpu.dma_semaphore, #tpu.memory_space<semaphore_mem>> -> memref<1x!tpu.dma_semaphore, #tpu.memory_space<semaphore_mem>>
      %59 = tpu.memref_squeeze %58 : memref<1x!tpu.dma_semaphore, #tpu.memory_space<semaphore_mem>> -> memref<!tpu.dma_semaphore, #tpu.memory_space<semaphore_mem>>
      tpu.wait_dma2 semaphore(%59 : memref<!tpu.dma_semaphore, #tpu.memory_space<semaphore_mem>>) src(%57 : memref<2x128xf32, #tpu.memory_space<any>>) dst(%arg10 : memref<2x128xf32, #tpu.memory_space<vmem>>)
      %c0_34 = arith.constant 0 : index
      %c0_35 = arith.constant 0 : index
      %60 = vector.load %arg10[%c0_34, %c0_35] : memref<2x128xf32, #tpu.memory_space<vmem>>, vector<2x128xf32>
      %c0_36 = arith.constant 0 : index
      %c0_37 = arith.constant 0 : index
      %61 = vector.load %arg9[%c0_36, %c0_37] : memref<20x128xf32, #tpu.memory_space<vmem>>, vector<2x128xf32>
      tpu.vector_store %arg9[%c0_36, %c0_37], %60 {strides = array<i32>} : memref<20x128xf32, #tpu.memory_space<vmem>>, vector<2x128xf32>,
    } else {
    }
    %c2_i32_9 = arith.constant 2 : i32
    %16 = arith.cmpi eq, %arg1, %c2_i32_9 : i32
    %17 = arith.extui %16 : i1 to i32
    %c0_i32_10 = arith.constant 0 : i32
    %18 = arith.cmpi ne, %17, %c0_i32_10 : i32
    scf.if %18 {
      %cst_31 = arith.constant 0.000000e+00 : f32
      %55 = vector.broadcast %cst_31 : f32 to vector<2x128xf32>
      %c18 = arith.constant 18 : index
      %c0_32 = arith.constant 0 : index
      %56 = vector.load %arg9[%c18, %c0_32] : memref<20x128xf32, #tpu.memory_space<vmem>>, vector<2x128xf32>
      tpu.vector_store %arg9[%c18, %c0_32], %55 {strides = array<i32>} : memref<20x128xf32, #tpu.memory_space<vmem>>, vector<2x128xf32>,
    } else {
    }
    %c2_i32_11 = arith.constant 2 : i32
    %19 = arith.cmpi slt, %arg1, %c2_i32_11 : i32
    %20 = arith.extui %19 : i1 to i32
    %c0_i32_12 = arith.constant 0 : i32
    %21 = arith.cmpi ne, %20, %c0_i32_12 : i32
    scf.if %21 {
      %c16_i32_31 = arith.constant 16 : i32
      %55 = arith.addi %0, %c16_i32_31 : i32
      %c1_i32 = arith.constant 1 : i32
      %c0_i32_32 = arith.constant 0 : i32
      %56 = tpu.memref_slice %arg2[%arg0, %55, %c0_i32_32] : memref<2x48x128xf32, #tpu.memory_space<any>> -> memref<1x2x128xf32, #tpu.memory_space<any>>
      %57 = tpu.memref_squeeze %56 : memref<1x2x128xf32, #tpu.memory_space<any>> -> memref<2x128xf32, #tpu.memory_space<any>>
      %58 = tpu.memref_slice %arg12[%c1_i32] : memref<2x!tpu.dma_semaphore, #tpu.memory_space<semaphore_mem>> -> memref<1x!tpu.dma_semaphore, #tpu.memory_space<semaphore_mem>>
      %59 = tpu.memref_squeeze %58 : memref<1x!tpu.dma_semaphore, #tpu.memory_space<semaphore_mem>> -> memref<!tpu.dma_semaphore, #tpu.memory_space<semaphore_mem>>
      tpu.wait_dma2 semaphore(%59 : memref<!tpu.dma_semaphore, #tpu.memory_space<semaphore_mem>>) src(%57 : memref<2x128xf32, #tpu.memory_space<any>>) dst(%arg11 : memref<2x128xf32, #tpu.memory_space<vmem>>)
      %c0_33 = arith.constant 0 : index
      %c0_34 = arith.constant 0 : index
      %60 = vector.load %arg11[%c0_33, %c0_34] : memref<2x128xf32, #tpu.memory_space<vmem>>, vector<2x128xf32>
      %c18 = arith.constant 18 : index
      %c0_35 = arith.constant 0 : index
      %61 = vector.load %arg9[%c18, %c0_35] : memref<20x128xf32, #tpu.memory_space<vmem>>, vector<2x128xf32>
      tpu.vector_store %arg9[%c18, %c0_35], %60 {strides = array<i32>} : memref<20x128xf32, #tpu.memory_space<vmem>>, vector<2x128xf32>,
    } else {
    }
    %c0_13 = arith.constant 0 : index
    %c0_14 = arith.constant 0 : index
    %22 = vector.load %arg9[%c0_13, %c0_14] : memref<20x128xf32, #tpu.memory_space<vmem>>, vector<20x128xf32>
    %23 = math.tanh %22 : vector<20x128xf32>
    %24 = vector.extract_strided_slice %23 {offsets = [0, 0], sizes = [16, 128], strides = [1, 1]} : vector<20x128xf32> to vector<16x128xf32>
    %25 = vector.extract_strided_slice %23 {offsets = [2, 0], sizes = [16, 128], strides = [1, 1]} : vector<20x128xf32> to vector<16x128xf32>
    %26 = vector.extract_strided_slice %23 {offsets = [4, 0], sizes = [16, 128], strides = [1, 1]} : vector<20x128xf32> to vector<16x128xf32>
    %27 = tpu.concatenate %24, %25, %26 in 1 : vector<16x128xf32>, vector<16x128xf32>, vector<16x128xf32> -> vector<16x384xf32>
    %c0_15 = arith.constant 0 : index
    %c0_16 = arith.constant 0 : index
    %28 = vector.load %arg4[%c0_15, %c0_16] : memref<384x128xf32, #tpu.memory_space<vmem>>, vector<384x128xf32>
    %cst = arith.constant dense<0.000000e+00> : vector<16x128xf32>
    %29 = tpu.matmul %27, %28, %cst {dimension_numbers = #tpu.dot_dimension_numbers<[1], [0], [0], [1], [0, 0, 1, 1], [], []>} : vector<16x384xf32>, vector<384x128xf32>, vector<16x128xf32> -> vector<16x128xf32>
    %c0_17 = arith.constant 0 : index
    %c0_18 = arith.constant 0 : index
    %30 = vector.load %arg5[%c0_17, %c0_18] : memref<1x128xf32, #tpu.memory_space<vmem>>, vector<1x128xf32>
    %31 = vector.broadcast %30 : vector<1x128xf32> to vector<16x128xf32>
    %32 = arith.addf %29, %31 : vector<16x128xf32>
    %33 = vector.extract_strided_slice %32 {offsets = [0, 0], sizes = [16, 64], strides = [1, 1]} : vector<16x128xf32> to vector<16x64xf32>
    %34 = vector.extract_strided_slice %32 {offsets = [0, 64], sizes = [16, 64], strides = [1, 1]} : vector<16x128xf32> to vector<16x64xf32>
    %cst_19 = arith.constant 0.000000e+00 : f32
    %35 = vector.broadcast %cst_19 : f32 to vector<16x64xf32>
    %36 = arith.subf %35, %33 : vector<16x64xf32>
    %37 = math.exp %36 : vector<16x64xf32>
    %cst_20 = arith.constant 1.000000e+00 : f32
    %38 = vector.broadcast %cst_20 : f32 to vector<16x64xf32>
    %39 = arith.addf %38, %37 : vector<16x64xf32>
    %cst_21 = arith.constant 1.000000e+00 : f32
    %40 = vector.broadcast %cst_21 : f32 to vector<16x64xf32>
    %41 = arith.divf %40, %39 : vector<16x64xf32>
    %42 = math.tanh %34 : vector<16x64xf32>
    %43 = arith.mulf %41, %42 : vector<16x64xf32>
    %c0_22 = arith.constant 0 : index
    %c0_23 = arith.constant 0 : index
    %44 = vector.load %arg6[%c0_22, %c0_23] : memref<64x128xf32, #tpu.memory_space<vmem>>, vector<64x128xf32>
    %cst_24 = arith.constant dense<0.000000e+00> : vector<16x128xf32>
    %45 = tpu.matmul %43, %44, %cst_24 {dimension_numbers = #tpu.dot_dimension_numbers<[1], [0], [0], [1], [0, 0, 1, 1], [], []>} : vector<16x64xf32>, vector<64x128xf32>, vector<16x128xf32> -> vector<16x128xf32>
    %c0_25 = arith.constant 0 : index
    %c0_26 = arith.constant 0 : index
    %46 = vector.load %arg7[%c0_25, %c0_26] : memref<1x128xf32, #tpu.memory_space<vmem>>, vector<1x128xf32>
    %47 = vector.broadcast %46 : vector<1x128xf32> to vector<16x128xf32>
    %48 = arith.addf %45, %47 : vector<16x128xf32>
    %cst_27 = arith.constant 0.707106769 : f32
    %49 = vector.broadcast %cst_27 : f32 to vector<16x128xf32>
    %50 = arith.mulf %49, %48 : vector<16x128xf32>
    %51 = arith.addf %8, %50 : vector<16x128xf32>
    %c0_28 = arith.constant 0 : index
    %c0_29 = arith.constant 0 : index
    %c0_30 = arith.constant 0 : index
    %52 = vector.load %arg8[%c0_28, %c0_29, %c0_30] : memref<1x16x128xf32, #tpu.memory_space<vmem>>, vector<1x16x128xf32>
    %53 = vector.shape_cast %52 : vector<1x16x128xf32> to vector<16x128xf32>
    %54 = vector.shape_cast %51 : vector<16x128xf32> to vector<1x16x128xf32>
    tpu.vector_store %arg8[%c0_28, %c0_29, %c0_30], %54 {strides = array<i32>} : memref<1x16x128xf32, #tpu.memory_space<vmem>>, vector<1x16x128xf32>,
    return
  }
  func.func @transform_1(%arg0: i32, %arg1: i32) -> (i32, i32, i32) {
    %c0_i32 = arith.constant 0 : i32
    %c0_i32_0 = arith.constant 0 : i32
    return %arg0, %arg1, %c0_i32 : i32, i32, i32
  }
  func.func @transform_2(%arg0: i32, %arg1: i32) -> (i32, i32) {
    %c0_i32 = arith.constant 0 : i32
    %c0_i32_0 = arith.constant 0 : i32
    %c0_i32_1 = arith.constant 0 : i32
    return %c0_i32, %c0_i32_0 : i32, i32
  }
  func.func @transform_3(%arg0: i32, %arg1: i32) -> (i32, i32) {
    %c0_i32 = arith.constant 0 : i32
    %c0_i32_0 = arith.constant 0 : i32
    %c0_i32_1 = arith.constant 0 : i32
    return %c0_i32, %c0_i32_0 : i32, i32
  }
  func.func @transform_4(%arg0: i32, %arg1: i32) -> (i32, i32) {
    %c0_i32 = arith.constant 0 : i32
    %c0_i32_0 = arith.constant 0 : i32
    %c0_i32_1 = arith.constant 0 : i32
    return %c0_i32, %c0_i32_0 : i32, i32
  }
  func.func @transform_5(%arg0: i32, %arg1: i32) -> (i32, i32) {
    %c0_i32 = arith.constant 0 : i32
    %c0_i32_0 = arith.constant 0 : i32
    %c0_i32_1 = arith.constant 0 : i32
    return %c0_i32, %c0_i32_0 : i32, i32
  }
  func.func @transform_6(%arg0: i32, %arg1: i32) -> (i32, i32, i32) {
    %c0_i32 = arith.constant 0 : i32
    %c0_i32_0 = arith.constant 0 : i32
    return %arg0, %arg1, %c0_i32 : i32, i32, i32
  }
}

</mosaic_0001>

<bundles_post_ra>
// kernel: res_conv1d_gated_block.1
= control target key start
LH: loop header
LB: loop body
LE: loop exit
PB: predicated region body
PF: predicated region fallthrough
CT: control target
= control target key end

     0   :  { %11 = vsyncpa [#allocation7], 0  ;;  %s1262_s21 = smov 0   ;;  %s1264_s22 = smov 0   ;;  %s1417_s0 = inlined_call_operand.vmem [shape: f32[2,48,128], index: 0, kind: input, shape index: {}, may-alias: {0,1}]   ;;  %s1418_s1 = inlined_call_operand.vmem [shape: f32[2,48,128], index: 1, kind: input, shape index: {}, may-alias: {0,1}]   ;;  %s1419_s2 = inlined_call_operand.hbm [shape: f32[384,128], index: 2, kind: input, shape index: {}]   ;;  %s1420_s3 = inlined_call_operand.vmem [shape: f32[1,128], index: 3, kind: input, shape index: {}]   ;;  %s1421_s4 = inlined_call_operand.vmem [shape: f32[64,128], index: 4, kind: input, shape index: {}]   ;;  %s1422_s5 = inlined_call_operand.vmem [shape: f32[1,128], index: 5, kind: input, shape index: {}]   ;;  %s1423_s6 = inlined_call_operand.vmem [shape: f32[2,48,128], index: 6, kind: output, shape index: {}]  }
   0x1   :  { %s1266_s23 = smov 0   ;;  %s1268_s24 = smov 0  }
   0x2   :  { %s1270_s25 = smov 0  }
   0x3 LB: > { %s922_s26 = sadd.s32 4294967295, %s1219_s25   ;;  %s26_s27 = sadd.s32 1, %s1211_s23  ;;  %s1219_s25 = sphi %s1270_s25, %s17_s25   ;;  %s1215_s24 = sphi %s1268_s24, %s1430_s24   ;;  %s1211_s23 = sphi %s1266_s23, %s1429_s23   ;;  %s1207_s22 = sphi %s1264_s22, %s1428_s22   ;;  %s1203_s21 = sphi %s1262_s21, %s1427_s21  }
   0x4   : > { %p27_p0 = scmp.ge.s32.totalorder %s26_s27, 3  ;;  %s29_s28 = sadd.s32 1, %s1215_s24 }
   0x5   : > { %p924_p1 = scmp.ge.s32.totalorder %s1219_s25, 1  ;;  %p174_p2 = scmp.lt.s32.totalorder %s1219_s25, 7 }
   0x6   : > { %s1432_s27 = smov (%p27_p0, %s26_s27), 0  ;;  %s1434_s28 = smov (!%p27_p0, %s29_s28), %s1215_s24 }
   0x7   : > { %p1295_p3 = pnand %p924_p1, %p174_p2  ;;  %p31_p4 = scmp.ge.s32.totalorder %s1434_s28, 2 }
   0x8   : > { %p1299_p5 = scmp.eq.s32.totalorder %s922_s26, 0  ;;  %s1221_s7 = smov [#allocation6]  }
   0x9   : > { %p1077_p6 = pneg %p1295_p3  ;;  %s1436_s28 = smov (%p31_p4, %s1434_s28), 0 }
   0xa   : > { %s186_s8 = sshll.u32 %s1221_s7, 4  ;;  %s187_s8 = int_to_ptr.vmem [resolvable:$true] %s186_s8 }
   0xb   : > { %p1309_p7 = pnand %p1299_p5, %p1077_p6  ;;  %s1158_s10 = scalar_lea.vmem %s187_s8, 6144 }
   0xc   : > { %p1159_p9 = scmp.ne.s32.totalorder %s187_s8, %s1158_s10  ;;  %p1166_p12 = scmp.lt.s32.totalorder %s187_s8, %s187_s8 }
   0xd   : > { %p1149_p8 = pneg %p1309_p7  ;;  %p1167_p13 = scmp.lt.s32.totalorder %s1158_s10, %s1158_s10 }
   0xf   : > { %p1161_p10 = pnand %p1159_p9, %p1149_p8  ;;  %p1168_p0 = por %p1167_p13, %p1166_p12 }
  0x11   : > { %p1162_p11 = pneg %p1161_p10 }
  0x13   : > { %p1169_p1 = pnand %p1168_p0, %p1162_p11 }
  0x15   : > { %1172 = shalt.err (!%p1169_p1)
}
  0x16   : > { %s1222_s11 = smov 128   ;;  %s1223_s12 = smov 8  }
  0x17   : > { %1080 = dma.hbm_to_vmem [thread:$0]  (!%p1309_p7), %s1419_s2, 6144, %s187_s8, [#allocation7], %s1222_s11, %s1222_s11, %s1223_s12  }
  0x18   : > { %224 = sbr.rel (%p1295_p3) target bundleno = 662 (0x296), region = 40 }
  0x1d   : > { %1194 = dma.done.wait (%p1299_p5), [#allocation7], 6144  }
  0x1e   : > { %1196 = vsyncadd (%p1299_p5), [#allocation7], 4294961152  ;;  %s929_s15 = sshll.u32 %s1203_s21, 1  ;;  %p261_p2 = scmp.lt.s32.totalorder %s1207_s22, 1 }
  0x1f   : > { %p263_p4 = scmp.lt.s32.totalorder %s929_s15, 5  ;;  %s933_s16 = sshll.u32 %s1203_s21, 4 }
  0x20   : > { %s262_s17 = scalar_select %p261_p2, %s1207_s22, 1 }
  0x21   : > { %s1438_s15 = smov (!%p263_p4, %s929_s15), 5  ;;  %p934_p3 = scmp.le.s32.totalorder %s1203_s21, 0 }
  0x22   : > { %s1072_s18 = smul.u32 6, %s262_s17  ;;  %s935_s10 = sadd.s32 (!%p934_p3), 4294967294, %s933_s16 }
  0x23   : > { %284 = sbr.rel (%p934_p3) target bundleno = 44 (0x2c), region = 48 }
  0x24   : > { %s266_s19 = sadd.s32 %s1072_s18, %s1438_s15  ;;  %s286_s11 = smul.u32 (!%p934_p3), 48, %s1207_s22 }
  0x25   : > { %s930_s20 = sshll.u32 %s266_s19, 3 }
  0x26   : > { %s268_s7 = scalar_lea.vmem %s1418_s1, %s930_s20  ;;  %s1336_s9 = scalar_lea.vmem %s1423_s6, %s930_s20 }
  0x27   : > { %s287_s12 = sadd.s32 (!%p934_p3), %s935_s10, %s286_s11 }
  0x28   : > { %s288_s15 = scalar_lea.vmem %s1417_s0, %s287_s12 }
  0x29   : > { %v307_v0 = vld [vmem:[%s288_s15] sm:$0x3] }
  0x2a   : > { %308 = vst [vmem:[#allocation3] sm:$0x3] %v307_v0 }
  0x2b   : > { %334 = vsyncadd [#allocation5], 32 }
  0x2c PF: > { %p936_p5 = scmp.ge.s32.totalorder %s1203_s21, 2 }
  0x2d   : > { %s850_s17 = smul.u32 (!%p936_p5), 48, %s1207_s22 }
  0x2e   : > { %338 = sbr.rel (%p936_p5) target bundleno = 54 (0x36), region = 82 }
  0x2f   : > { %s851_s18 = sadd.s32 (!%p936_p5), %s933_s16, %s850_s17 }
  0x30   : > { %s852_s26 = scalar_lea.vmem (!%p936_p5), %s1417_s0, %s851_s18 }
  0x33   : > { %v939_v1 = vld [vmem:[%s852_s26 + $0x10] sm:$0x3] }
  0x34   : > { %363 = vst [vmem:[#allocation4] sm:$0x3] %v939_v1 }
  0x35   : > { %389 = vsyncadd [#allocation5 + $0x1], 32 }
  0x36 PF: > { %v1352_v2 = vld [vmem:[%s268_s7] sm:$0xff]  ;;  %v1354_v3 = vld [vmem:[%s268_s7 + $0x8] sm:$0xff]  ;;  %p940_p6 = scmp.ne.s32.totalorder %s1203_s21, 0 }
  0x37   : > { %392 = vst [vmem:[#allocation2 + $0x2] sm:$0xff] %v1352_v2  ;;  %393 = vst [vmem:[#allocation2 + $0xa] sm:$0xff] %v1354_v3 }
  0x38   : > { %397 = sbr.rel (%p940_p6) target bundleno = 63 (0x3f), region = 116 }
  0x3d   : > { %v1224_v4 = vmov 0.0  }
  0x3e   : > { %398 = vst [vmem:[#allocation2] sm:$0x3] %v1224_v4 }
  0x3f PF: > { %401 = sbr.rel (%p934_p3) target bundleno = 71 (0x47), region = 120 }
  0x44   : > { %1197 = dma.done.wait [#allocation5], 32 }
  0x45   : > { %1198 = vsyncadd [#allocation5], 4294967264  ;;  %v405_v5 = vld [vmem:[#allocation3] sm:$0x3] }
  0x46   : > { %406 = vst [vmem:[#allocation2] sm:$0x3] %v405_v5 }
  0x47 PF: > { %p942_p7 = scmp.ne.s32.totalorder %s1203_s21, 2 }
  0x49   : > { %410 = sbr.rel (%p942_p7) target bundleno = 80 (0x50), region = 124 }
  0x4e   : > { %v1225_v6 = vmov 0.0  }
  0x4f   : > { %411 = vst [vmem:[#allocation2 + $0x12] sm:$0x3] %v1225_v6 }
  0x50 PF: > { %414 = sbr.rel (%p936_p5) target bundleno = 88 (0x58), region = 128 }
  0x55   : > { %1199 = dma.done.wait [#allocation5 + $0x1], 32 }
  0x56   : > { %1200 = vsyncadd [#allocation5 + $0x1], 4294967264  ;;  %v419_v7 = vld [vmem:[#allocation4] sm:$0x3] }
  0x57   : > { %420 = vst [vmem:[#allocation2 + $0x12] sm:$0x3] %v419_v7 }
  0x58 PF: > { %vm430_vm0 = vcmask 1045504   ;;  %vm438_vm1 = vcmask 1043456   ;;  %s1226_s21 = smov 64   ;;  %vm690_vm2 = vcmask 523264  }
  0x59   : > { %v477_v8 = vld [vmem:[#allocation6 + $0xf8] sm:$0xff]  ;;  %v476_v10 = vld [vmem:[#allocation6 + $0xf0] sm:$0xff]  ;;  %v475_v13 = vld [vmem:[#allocation6 + $0xe8] sm:$0xff] }
  0x5a   : > { %v461_v9 = vld [vmem:[#allocation6 + $0x78] sm:$0xff]  ;;  %952 = vmatprep.subr.mxu0 %v477_v8  ;;  %v460_v12 = vld [vmem:[#allocation6 + $0x70] sm:$0xff]  ;;  %v459_v15 = vld [vmem:[#allocation6 + $0x68] sm:$0xff] }
  0x5b   : > { %v493_v11 = vld [vmem:[#allocation6 + $0x178] sm:$0xff]  ;;  %953 = vmatpush3.msra.mxu0 %v461_v9  ;;  %v492_v14 = vld [vmem:[#allocation6 + $0x170] sm:$0xff]  ;;  %v491_v16 = vld [vmem:[#allocation6 + $0x168] sm:$0xff] }
  0x5c   : > { %1018 = vmatprep.subr.mxu1 %v493_v11  ;;  %954 = vmatprep.subr.mxu0 %v476_v10  ;;  %v474_v17 = vld [vmem:[#allocation6 + $0xe0] sm:$0xff]  ;;  %v473_v20 = vld [vmem:[#allocation6 + $0xd8] sm:$0xff]  ;;  %v472_v23 = vld [vmem:[#allocation6 + $0xd0] sm:$0xff] }
  0x5d   : > { %1019 = vmatpush3.msra.mxu1 %v493_v11  ;;  %955 = vmatpush3.msra.mxu0 %v460_v12  ;;  %v458_v18 = vld [vmem:[#allocation6 + $0x60] sm:$0xff]  ;;  %v457_v21 = vld [vmem:[#allocation6 + $0x58] sm:$0xff]  ;;  %v456_v24 = vld [vmem:[#allocation6 + $0x50] sm:$0xff] }
  0x5e   : > { %1020 = vmatprep.subr.mxu1 %v492_v14  ;;  %956 = vmatprep.subr.mxu0 %v475_v13  ;;  %v490_v19 = vld [vmem:[#allocation6 + $0x160] sm:$0xff]  ;;  %v489_v22 = vld [vmem:[#allocation6 + $0x158] sm:$0xff]  ;;  %v488_v25 = vld [vmem:[#allocation6 + $0x150] sm:$0xff] }
  0x5f   : > { %1021 = vmatpush3.msra.mxu1 %v492_v14  ;;  %957 = vmatpush3.msra.mxu0 %v459_v15  ;;  %v471_v26 = vld [vmem:[#allocation6 + $0xc8] sm:$0xff]  ;;  %v470_v29 = vld [vmem:[#allocation6 + $0xc0] sm:$0xff]  ;;  %v469_v32 = vld [vmem:[#allocation6 + $0xb8] sm:$0xff] }
  0x60   : > { %1022 = vmatprep.subr.mxu1 %v491_v16  ;;  %958 = vmatprep.subr.mxu0 %v474_v17  ;;  %v455_v27 = vld [vmem:[#allocation6 + $0x48] sm:$0xff]  ;;  %v454_v30 = vld [vmem:[#allocation6 + $0x40] sm:$0xff]  ;;  %v453_v33 = vld [vmem:[#allocation6 + $0x38] sm:$0xff] }
  0x61   : > { %1023 = vmatpush3.msra.mxu1 %v491_v16  ;;  %959 = vmatpush3.msra.mxu0 %v458_v18  ;;  %v487_v28 = vld [vmem:[#allocation6 + $0x148] sm:$0xff]  ;;  %v486_v31 = vld [vmem:[#allocation6 + $0x140] sm:$0xff]  ;;  %v485_v34 = vld [vmem:[#allocation6 + $0x138] sm:$0xff] }
  0x62   : > { %1024 = vmatprep.subr.mxu1 %v490_v19  ;;  %960 = vmatprep.subr.mxu0 %v473_v20  ;;  %v421_v35 = vld [vmem:[#allocation2] sm:$0xff]  ;;  %v468_v36 = vld [vmem:[#allocation6 + $0xb0] sm:$0xff]  ;;  %v465_v47 = vld [vmem:[#allocation6 + $0x98] sm:$0xff] }
  0x63   : > { %1025 = vmatpush3.msra.mxu1 %v490_v19  ;;  %961 = vmatpush3.msra.mxu0 %v457_v21  ;;  %v422_v37 = vld [vmem:[#allocation2 + $0x8] sm:$0xff]  ;;  %1129 = vtanh.f32 %v421_v35  ;;  %v423_v38 = vld [vmem:[#allocation2 + $0x10] sm:$0xf]  ;;  %v466_v44 = vld [vmem:[#allocation6 + $0xa0] sm:$0xff] }
  0x64   : > { %1026 = vmatprep.subr.mxu1 %v489_v22  ;;  %962 = vmatprep.subr.mxu0 %v472_v23  ;;  %v452_v39 = vld [vmem:[#allocation6 + $0x30] sm:$0xff]  ;;  %1131 = vtanh.f32 %v422_v37  ;;  %v467_v41 = vld [vmem:[#allocation6 + $0xa8] sm:$0xff]  ;;  %v450_v45 = vld [vmem:[#allocation6 + $0x20] sm:$0xff] }
  0x65   : > { %1027 = vmatpush3.msra.mxu1 %v489_v22  ;;  %963 = vmatpush3.msra.mxu0 %v456_v24  ;;  %v484_v40 = vld [vmem:[#allocation6 + $0x130] sm:$0xff]  ;;  %1133 = vtanh.f32 %v423_v38  ;;  %v451_v42 = vld [vmem:[#allocation6 + $0x28] sm:$0xff]  ;;  %v482_v46 = vld [vmem:[#allocation6 + $0x120] sm:$0xff] }
  0x66   : > { %1028 = vmatprep.subr.mxu1 %v488_v25  ;;  %964 = vmatprep.subr.mxu0 %v471_v26  ;;  %v483_v43 = vld [vmem:[#allocation6 + $0x128] sm:$0xff]  ;;  %v449_v48 = vld [vmem:[#allocation6 + $0x18] sm:$0xff]  ;;  %v464_v50 = vld [vmem:[#allocation6 + $0x90] sm:$0xff] }
  0x67   : > { %1029 = vmatpush3.msra.mxu1 %v488_v25  ;;  %965 = vmatpush3.msra.mxu0 %v455_v27  ;;  %v481_v49 = vld [vmem:[#allocation6 + $0x118] sm:$0xff]  ;;  %v448_v51 = vld [vmem:[#allocation6 + $0x10] sm:$0xff]  ;;  %v463_v53 = vld [vmem:[#allocation6 + $0x88] sm:$0xff] }
  0x68   : > { %1030 = vmatprep.subr.mxu1 %v487_v28  ;;  %966 = vmatprep.subr.mxu0 %v470_v29  ;;  %v480_v52 = vld [vmem:[#allocation6 + $0x110] sm:$0xff]  ;;  %v447_v54 = vld [vmem:[#allocation6 + $0x8] sm:$0xff]  ;;  %v462_v56 = vld [vmem:[#allocation6 + $0x80] sm:$0xff] }
  0x69   : > { %1031 = vmatpush3.msra.mxu1 %v487_v28  ;;  %967 = vmatpush3.msra.mxu0 %v454_v30  ;;  %v479_v55 = vld [vmem:[#allocation6 + $0x108] sm:$0xff]  ;;  %v446_v58 = vld [vmem:[#allocation6] sm:$0xff]  ;;  %v681_v11 = vld [vmem:[%s1421_s4 + $0x30] sm:$0xff] }
  0x6a   : > { %1032 = vmatprep.subr.mxu1 %v486_v31  ;;  %968 = vmatprep.subr.mxu0 %v469_v32  ;;  %v478_v59 = vld [vmem:[#allocation6 + $0x100] sm:$0xff]  ;;  %v680_v12 = vld [vmem:[%s1421_s4 + $0x28] sm:$0xff]  ;;  %v677_v27 = vld [vmem:[%s1421_s4 + $0x10] sm:$0xff] }
  0x6b   : > { %1033 = vmatpush3.msra.mxu1 %v486_v31  ;;  %969 = vmatpush3.msra.mxu0 %v453_v33  ;;  %v682_v10 = vld [vmem:[%s1421_s4 + $0x38] sm:$0xff]  ;;  %v679_v13 = vld [vmem:[%s1421_s4 + $0x20] sm:$0xff]  ;;  %v676_v28 = vld [vmem:[%s1421_s4 + $0x8] sm:$0xff] }
  0x6c   : > { %1034 = vmatprep.subr.mxu1 %v485_v34  ;;  %970 = vmatprep.subr.mxu0 %v468_v36  ;;  %v678_v14 = vld [vmem:[%s1421_s4 + $0x18] sm:$0xff]  ;;  %v944_v18 = vld [vmem:[%s1420_s3] ss:$0 sm:$0xff] }
  0x6d   : > { %1035 = vmatpush3.msra.mxu1 %v485_v34  ;;  %971 = vmatpush3.msra.mxu0 %v452_v39  ;;  %v675_v30 = vld [vmem:[%s1421_s4] sm:$0xff] }
  0x6e   : > { %1036 = vmatprep.subr.mxu1 %v484_v40  ;;  %972 = vmatprep.subr.mxu0 %v467_v41 }
  0x6f   : > { %1037 = vmatpush3.msra.mxu1 %v484_v40  ;;  %973 = vmatpush3.msra.mxu0 %v451_v42 }
  0x70   : > { %1038 = vmatprep.subr.mxu1 %v483_v43  ;;  %974 = vmatprep.subr.mxu0 %v466_v44  ;;  %v1130_v57 = vpop.eup %1129 }
  0x71   : > { %1039 = vmatpush3.msra.mxu1 %v483_v43  ;;  %975 = vmatpush3.msra.mxu0 %v450_v45  ;;  %v1132_v60 = vpop.eup %1131  ;;  %v431_v61 = vrot.slane %v1130_v57, 2  ;;  %v439_v62 = vrot.slane %v1130_v57, 4 }
  0x72   : > { %1040 = vmatprep.subr.mxu1 %v482_v46  ;;  %976 = vmatprep.subr.mxu0 %v465_v47  ;;  %v1134_v63 = vpop.eup %1133  ;;  %v432_v0 = vrot.slane %v1132_v60, 2  ;;  %v440_v1 = vrot.slane %v1132_v60, 4  ;;  %v945_v47 = vld [vmem:[%s1422_s5] ss:$0 sm:$0xff] }
  0x73   : > { %1041 = vmatpush3.msra.mxu1 %v482_v46  ;;  %977 = vmatpush3.msra.mxu0 %v449_v48  ;;  %v442_v4 = vrot.slane %v1134_v63, 4  ;;  %v434_v5 = vrot.slane %v1134_v63, 2 }
  0x74   : > { %1042 = vmatprep.subr.mxu1 %v481_v49  ;;  %978 = vmatprep.subr.mxu0 %v464_v50  ;;  %v433_v6 = vsel %vm430_vm0, %v431_v61, %v432_v0  ;;  %v441_v7 = vsel %vm438_vm1, %v439_v62, %v440_v1 }
  0x75   : > { %1043 = vmatpush3.msra.mxu1 %v481_v49  ;;  %979 = vmatpush3.msra.mxu0 %v448_v51  ;;  %v443_v8 = vsel %vm438_vm1, %v440_v1, %v442_v4  ;;  %v435_v9 = vsel %vm430_vm0, %v432_v0, %v434_v5 }
  0x76   : > { %1044 = vmatprep.subr.mxu1 %v480_v52  ;;  %980 = vmatprep.subr.mxu0 %v463_v53 }
  0x77   : > { %1045 = vmatpush3.msra.mxu1 %v480_v52  ;;  %981 = vmatpush3.msra.mxu0 %v447_v54 }
  0x78   : > { %1046 = vmatprep.subr.mxu1 %v479_v55  ;;  %982 = vmatprep.subr.mxu0 %v462_v56 }
  0x79   : > { %1047 = vmatpush3.msra.mxu1 %v479_v55  ;;  %983 = vmatpush3.msra.mxu0 %v446_v58 }
  0x7a   : > { %1048 = vmatprep.subr.mxu1 %v478_v59  ;;  %565 = vmatprep.mubr.f32.mxu0 %v433_v6 }
  0x7b   : > { %1049 = vmatpush3.msra.mxu1 %v478_v59  ;;  %1050 = vmatprep.mubr.f32.mxu1 %v441_v7 }
  0x7c   : > { %566 = vmatmul.mubr.f32.vlgmr.msra.gmra.mxu0 %v1130_v57  ;;  %1051 = vmatmul.mubr.f32.vlgmr.msra.gmra.mxu1 %v443_v8 }
  0x7d   : > { %570 = vmatprep.mubr.f32.mxu0 %v435_v9  ;;  %1053 = vmatprep.subr.mxu0 %v682_v10 }
  0x7e   : > { %1054 = vmatpush3.msra.mxu0 %v682_v10 }
  0x7f   : > { %1055 = vmatprep.subr.mxu0 %v681_v11 }
  0x80   : > { %571 = vmatmul.mubr.f32.gmra.mxu0 %v1132_v60 }
  0x81   : > { %1056 = vmatpush3.msra.mxu0 %v681_v11 }
  0x82   : > { %1057 = vmatprep.subr.mxu0 %v680_v12 }
  0x83   : > { %1058 = vmatpush3.msra.mxu0 %v680_v12 }
  0x84   : > { %1059 = vmatprep.subr.mxu0 %v679_v13 }
  0x85   : > { %1060 = vmatpush3.msra.mxu0 %v679_v13 }
  0x86   : > { %1061 = vmatprep.subr.mxu0 %v678_v14 }
  0x87   : > { %1062 = vmatpush3.msra.mxu0 %v678_v14 }
  0x88   : > { %1063 = vmatprep.subr.mxu0 %v677_v27 }
  0x89   : > { %1064 = vmatpush3.msra.mxu0 %v677_v27 }
  0x8a   : > { %1065 = vmatprep.subr.mxu0 %v676_v28 }
  0x8b   : > { %1066 = vmatpush3.msra.mxu0 %v676_v28 }
  0x8c   : > { %1067 = vmatprep.subr.mxu0 %v675_v30 }
  0x8d   : > { %1068 = vmatpush3.msra.mxu0 %v675_v30 }
 0x13c   : > { %v984_v15 = vpop.f32.mrf.mxu0  ;;  %v1052_v17 = vpop.f32.mrf.mxu1 }
 0x13e   : > { %v985_v16 = vpop.f32.mrf.mxu0  ;;  %v642_v22 = vpop.f32.mrf.mxu1 }
 0x13f   : > { %v986_v19 = vadd.f32 %v985_v16, %v984_v15 }
 0x140   : > { %v987_v20 = vpop.f32.mrf.mxu0 }
 0x141   : > { %v568_v21 = vadd.f32 %v986_v19, %v944_v18 }
 0x142   : > { %v988_v23 = vpop.f32.mrf.mxu0 }
 0x143   : > { %v643_v24 = vadd.f32 %v642_v22, %v568_v21  ;;  %v989_v25 = vadd.f32 %v988_v23, %v987_v20 }
 0x145   : > { %1135 = vtanh.f32 %v643_v24  ;;  %v573_v26 = vadd.f32 %v989_v25, %v944_v18  ;;  %v651_v33 = vsub.f32 0.0, %v643_v24 }
 0x147   : > { %v648_v29 = vadd.f32 %v1052_v17, %v573_v26  ;;  %v653_v34 = vmul.f32 1.442695, %v651_v33 }
 0x149   : > { %1137 = vtanh.f32 %v648_v29  ;;  %v652_v35 = vsub.f32 0.0, %v648_v29 }
 0x14a   : > { %1139 = vpow2.f32 %v653_v34 }
 0x14b   : > { %v655_v36 = vmul.f32 1.442695, %v652_v35 }
 0x14d   : > { %1141 = vpow2.f32 %v655_v36 }
 0x152   : > { %v1136_v31 = vpop.eup %1135 }
 0x153   : > { %667 = vrot.lane.b32.xlu0 %v1136_v31, %s1226_s21 }
 0x156   : > { %v1138_v32 = vpop.eup %1137 }
 0x157   : > { %669 = vrot.lane.b32.xlu0 %v1138_v32, %s1226_s21  ;;  %v1140_v37 = vpop.eup %1139 }
 0x158   : > { %v657_v38 = vadd.f32 1.0, %v1140_v37 }
 0x15a   : > { %v1142_v39 = vpop.eup %1141  ;;  %1143 = vrcp.f32 %v657_v38 }
 0x15b   : > { %v658_v40 = vadd.f32 1.0, %v1142_v39 }
 0x15d   : > { %1145 = vrcp.f32 %v658_v40 }
 0x167   : > { %v1144_v41 = vpop.eup %1143 }
 0x16a   : > { %v1146_v44 = vpop.eup %1145 }
 0x1c5   : > { %v668_v42 = vpop.permute.xlu0 %667 }
 0x1c6   : > { %v673_v43 = vmul.f32 %v1144_v41, %v668_v42 }
 0x1c8   : > { %1069 = vmatprep.mubr.msk.f32.mxu0 %vm690_vm2, %v673_v43 }
 0x1c9   : > { %v670_v45 = vpop.permute.xlu0 %669 }
 0x1ca   : > { %v674_v46 = vmul.f32 %v1146_v44, %v670_v45 }
 0x1cc   : > { %1070 = vmatmul.mubr.msk.f32.vlgmr.msra.gmra.mxu0 %vm690_vm2, %v674_v46 }
 0x28c   : > { %v1071_v48 = vpop.f32.mrf.mxu0 }
 0x28d   : > { %v769_v49 = vadd.f32 %v1071_v48, %v945_v47 }
 0x28e   : > { %v763_v50 = vpop.f32.mrf.mxu0 }
 0x28f   : > { %v773_v51 = vmul.f32 0.70710677, %v769_v49  ;;  %v764_v52 = vadd.f32 %v945_v47, %v763_v50 }
 0x291   : > { %v775_v53 = vadd.f32 %v773_v51, %v1354_v3  ;;  %v772_v54 = vmul.f32 0.70710677, %v764_v52 }
 0x293   : > { %777 = vst [vmem:[%s1336_s9 + $0x8] sm:$0xff] %v775_v53  ;;  %v774_v55 = vadd.f32 %v772_v54, %v1352_v2 }
 0x295   : > { %776 = vst [vmem:[%s1336_s9] sm:$0xff] %v774_v55 }
 0x296 PF: > { %s17_s25 = sadd.s32 1, %s1219_s25   ;;  %s1427_s21 = smov %s1211_s23 }
 0x297   : > { %p14_p8 = scmp.ge.s32.totalorder %s17_s25, 8   ;;  %s1428_s22 = smov %s1215_s24 }
 0x298   : > { %s1429_s23 = smov %s1432_s27  ;;  %s1430_s24 = smov %s1436_s28 }
 0x299   :  { %16 = sbr.rel (!%p14_p8) target bundleno = 3 (0x3), region = 184 }
 0x29e   :  { %808 = vsyncpa [#allocation7], 1 }
 0x29f   :  { %810 = vsyncpa [#allocation7 + $0x1], 1 }
 0x2a0   :  { %811 = vsyncmov [#allocation5] }
 0x2a3   :  { %s812_s9 = vpop.sfrf %811 }
 0x2a4   :  { %p950_p9 = scmp.ne.s32.totalorder %s812_s9, 0 }
 0x2a6   :  { %816 = shalt.err (%p950_p9)  }
 0x2a7   :  { %818 = vsyncmov [#allocation5 + $0x1] }
 0x2aa   :  { %s819_s29 = vpop.sfrf %818 }
 0x2ab   :  { %p951_p10 = scmp.ne.s32.totalorder %s819_s29, 0 }
 0x2ad   :  { %823 = shalt.err (%p951_p10)  }

</bundles_post_ra>
